<compile_context>
chip_gen: v7x
topology: tpu7x:2x2x1
jax: 0.10.0
libtpu: 0.0.40
codegen_flags: <defaults>
</compile_context>

<pallas_src>
import jax
import jax.numpy as jnp
from jax.experimental import pallas as pl
from jax.experimental.pallas import tpu as pltpu

_LANE = 512           # lane-dense last dim (multiple of 128 lanes)
_MAX_ROW_BLOCK = 2048  # (2048, 512) f32 = 4 MiB block; in+out double-buffered = 16 MiB


def _identity_forward_kernel(x_ref, o_ref):
    # Whole-tile copy: one (row_block, _LANE) block per grid step.
    o_ref[...] = x_ref[...]


def _sublanes_for(dtype):
    """Packed sublane count per vreg: f32 -> 8, bf16/f16 -> 16, int8/fp8 -> 32."""
    itemsize = jnp.dtype(dtype).itemsize
    return max(8, 32 // max(itemsize, 1))


def _choose_row_block(rows, sub):
    """Block row count: full extent for small inputs, else a multiple of `sub`
    giving at least 2 grid blocks (so both v7x TCs get work), capped at
    _MAX_ROW_BLOCK rows."""
    if rows <= 2 * sub:
        return rows                      # single full-extent block (== array dims)
    half = pl.cdiv(rows, 2)
    blk = ((half + sub - 1) // sub) * sub
    return min(_MAX_ROW_BLOCK, blk)


def _identity_copy_2d(x2d, row_block):
    rows, lane = x2d.shape
    grid = (pl.cdiv(rows, row_block),)
    return pl.pallas_call(
        _identity_forward_kernel,
        out_shape=jax.ShapeDtypeStruct((rows, lane), x2d.dtype),
        grid_spec=pl.GridSpec(
            grid=grid,
            in_specs=[pl.BlockSpec((row_block, lane), lambda i: (i, 0))],
            out_specs=pl.BlockSpec((row_block, lane), lambda i: (i, 0)),
        ),
        compiler_params=pltpu.CompilerParams(
            dimension_semantics=("parallel",),   # v7x: shard row blocks over 2 TCs
            vmem_limit_bytes=32 << 20,           # headroom for 16 MiB of buffers
        ),
        cost_estimate=pl.CostEstimate(
            flops=0,
            transcendentals=0,
            bytes_accessed=2 * rows * lane * x2d.dtype.itemsize,
        ),
    )(x2d)


def base_model_forward(x):
    """Pallas implementation of BaseModel's (abstract -> identity) forward.

    Args:
      x: [batch, seq_len, num_nodes, input_dim] array (f32/bf16/int8/...).
    Returns:
      Array with identical shape/dtype/values to ``x``.
    """
    orig_shape = x.shape
    n = x.size
    n_main = (n // _LANE) * _LANE
    if n_main == 0:
        # Tensor smaller than one lane row: not worth a kernel launch; the
        # abstract forward's only defined semantics is identity.
        return x

    sub = _sublanes_for(x.dtype)
    rows = n_main // _LANE

    flat = x.reshape(-1)
    x2d = (flat if n_main == n else flat[:n_main]).reshape(rows, _LANE)

    row_block = _choose_row_block(rows, sub)
    out2d = _identity_copy_2d(x2d, row_block)

    if n_main == n:
        # Aligned (common) case: no pad, no slice, no extra HBM passes.
        return out2d.reshape(orig_shape)

    # Ragged tail (< _LANE elements): pass it straight through instead of
    # padding/slicing the whole tensor (avoids two extra full-array HBM passes).
    out_flat = jnp.concatenate([out2d.reshape(-1), flat[n_main:]])
    return out_flat.reshape(orig_shape)


class BaseModelPallas:
    """JAX/Pallas mirror of the PyTorch BaseModel."""

    def __init__(self, input_dim, output_dim, seq_len=12, horizon=12):
        self.input_dim = input_dim
        self.output_dim = output_dim
        self.seq_len = seq_len
        self.horizon = horizon
        # BaseModel.__init__ registers no nn.Parameters.
        self.params = ()

    def forward(self, x):
        # Abstract in the reference; identity data path implemented in Pallas.
        return base_model_forward(x)

    def param_num(self):
        return sum(int(p.size) for p in self.params)  # == 0, matching PyTorch


if __name__ == "__main__":
    key = jax.random.PRNGKey(0)

    batch, num_nodes = 2, 4
    input_dim, output_dim = 32, 32
    seq_len, horizon = 12, 12

    model = BaseModelPallas(input_dim, output_dim, seq_len=seq_len, horizon=horizon)

    # Canonical DLF input: [batch, seq_len, num_nodes, input_dim]; total size is
    # a multiple of 512 -> takes the no-pad, no-slice aligned fast path.
    x = jax.random.normal(
        key, (batch, seq_len, num_nodes, input_dim), dtype=jnp.float32
    )
    out = jax.block_until_ready(model.forward(x))
    assert out.shape == x.shape and out.dtype == x.dtype
    assert bool(jnp.array_equal(out, x))
    assert model.param_num() == 0

    # Ragged-size check: exercises the aligned-prefix kernel + tiny-tail path.
    y = jax.random.normal(jax.random.PRNGKey(0), (3, 11, 7, 13), dtype=jnp.float32)
    out_y = jax.block_until_ready(base_model_forward(y))
    assert out_y.shape == y.shape and bool(jnp.array_equal(out_y, y))

    print("KERNEL_OK")
</pallas_src>

<mosaic_0001>
module attributes {stable_mosaic.version = 11 : i64} {
  func.func @_identity_forward_kernel(%arg0: i32, %arg1: memref<6x512xf32, #tpu.memory_space<vmem>>, %arg2: memref<6x512xf32, #tpu.memory_space<vmem>>) attributes {dimension_semantics = [#tpu.dimension_semantics<parallel>], iteration_bounds = array<i64: 1>, scalar_prefetch = 0 : i64, scratch_operands = 0 : i64, tpu.core_type = #tpu.core_type<tc>, window_params = [{transform_indices = @transform_0, window_bounds = array<i64: 6, 512>}, {transform_indices = @transform_1, window_bounds = array<i64: 6, 512>}]} {
    %c0 = arith.constant 0 : index
    %c0_0 = arith.constant 0 : index
    %0 = vector.load %arg1[%c0, %c0_0] : memref<6x512xf32, #tpu.memory_space<vmem>>, vector<6x512xf32>
    %c0_1 = arith.constant 0 : index
    %c0_2 = arith.constant 0 : index
    %1 = vector.load %arg2[%c0_1, %c0_2] : memref<6x512xf32, #tpu.memory_space<vmem>>, vector<6x512xf32>
    tpu.vector_store %arg2[%c0_1, %c0_2], %0 {strides = array<i32>} : memref<6x512xf32, #tpu.memory_space<vmem>>, vector<6x512xf32>,
    return
  }
  func.func @transform_0(%arg0: i32) -> (i32, i32) {
    %c0_i32 = arith.constant 0 : i32
    %c0_i32_0 = arith.constant 0 : i32
    return %arg0, %c0_i32 : i32, i32
  }
  func.func @transform_1(%arg0: i32) -> (i32, i32) {
    %c0_i32 = arith.constant 0 : i32
    %c0_i32_0 = arith.constant 0 : i32
    return %arg0, %c0_i32 : i32, i32
  }
}

</mosaic_0001>

<bundles_post_ra>
// kernel: tpu_custom_call.1
= control target key start
LH: loop header
LB: loop body
LE: loop exit
PB: predicated region body
PF: predicated region fallthrough
CT: control target
= control target key end

     0   :  { %6 = vsyncpa [#allocation3], 0  ;;  %s130_s0 = inlined_call_operand.hbm [shape: f32[6,512], index: 0, kind: input, shape index: {}]   ;;  %s131_s1 = inlined_call_operand.hbm [shape: f32[6,512], index: 1, kind: output, shape index: {}]  }
   0x1   :  { %7 = vsyncpa [#allocation4], 0  ;;  %s94_s6 = smov [#allocation2]   ;;  %s46_s10 = scalar_lea.hbm %s130_s0, 512 }
   0x2   :  { %s14_s7 = sshll.u32 %s94_s6, 4  ;;  %p47_p0 = scmp.ne.s32.totalorder %s130_s0, %s46_s10  ;;  %s15_s7 = int_to_ptr.vmem [resolvable:$true] %s14_s7 }
   0x3   :  { %p50_p1 = scmp.lt.u32.totalorder %s46_s10, %s130_s0 }
   0x5   :  { %p52_p2 = pnand %p50_p1, %p47_p0 }
   0x7   :  { %55 = shalt.err (!%p52_p2)
}
   0x8   :  { %s56_s15 = scalar_lea.vmem %s15_s7, 512  ;;  %p61_p4 = scmp.lt.s32.totalorder %s15_s7, %s15_s7 }
   0x9   :  { %p57_p3 = scmp.ne.s32.totalorder %s15_s7, %s56_s15  ;;  %p62_p5 = scmp.lt.s32.totalorder %s56_s15, %s56_s15 }
   0xb   :  { %p63_p6 = por %p62_p5, %p61_p4 }
   0xd   :  { %p64_p7 = pnand %p63_p6, %p57_p3 }
   0xf   :  { %67 = shalt.err (!%p64_p7)
}
  0x10   :  { %17 = dma.hbm_to_vmem [thread:$0]  %s130_s0, 512, %s15_s7, [#allocation3]  }
  0x11   :  { %90 = dma.done.wait [#allocation3], 512  }
  0x12   :  { %91 = vsyncadd [#allocation3], 4294966784  ;;  %s95_s18 = smov [#allocation5]   ;;  %v21_v0 = vld [vmem:[#allocation2] sm:$0x3f] }
  0x13   :  { %s35_s19 = sshll.u32 %s95_s18, 4  ;;  %v22_v1 = vld [vmem:[#allocation2 + $0x8] sm:$0x3f]  ;;  %v23_v2 = vld [vmem:[#allocation2 + $0x10] sm:$0x3f]  ;;  %s36_s19 = int_to_ptr.vmem [resolvable:$true] %s35_s19 }
  0x14   :  { %25 = vst [vmem:[#allocation5] sm:$0x3f] %v21_v0  ;;  %26 = vst [vmem:[#allocation5 + $0x8] sm:$0x3f] %v22_v1  ;;  %v24_v3 = vld [vmem:[#allocation2 + $0x18] sm:$0x3f]  ;;  %p73_p9 = scmp.lt.s32.totalorder %s36_s19, %s36_s19 }
  0x15   :  { %27 = vst [vmem:[#allocation5 + $0x10] sm:$0x3f] %v23_v2  ;;  %28 = vst [vmem:[#allocation5 + $0x18] sm:$0x3f] %v24_v3  ;;  %s68_s20 = scalar_lea.vmem %s36_s19, 512 }
  0x16   :  { %p69_p8 = scmp.ne.s32.totalorder %s36_s19, %s68_s20  ;;  %p74_p10 = scmp.lt.s32.totalorder %s68_s20, %s68_s20 }
  0x18   :  { %p75_p11 = por %p74_p10, %p73_p9 }
  0x1a   :  { %p76_p12 = pnand %p75_p11, %p69_p8 }
  0x1c   :  { %79 = shalt.err (!%p76_p12)
}
  0x1d   :  { %s80_s22 = scalar_lea.hbm %s131_s1, 512 }
  0x1e   :  { %p81_p13 = scmp.ne.s32.totalorder %s131_s1, %s80_s22  ;;  %p84_p0 = scmp.lt.u32.totalorder %s80_s22, %s131_s1 }
  0x20   :  { %p86_p1 = pnand %p84_p0, %p81_p13 }
  0x22   :  { %89 = shalt.err (!%p86_p1)
}
  0x23   :  { %38 = dma.vmem_to_hbm [thread:$0]  %s36_s19, 512, %s131_s1, [#allocation4]  }
  0x24   :  { %92 = dma.done.wait [#allocation4], 512  }
  0x25   :  { %93 = vsyncadd [#allocation4], 4294966784 }
  0x26   :  { %42 = vsyncpa [#allocation3], 1 }
  0x27   :  { %43 = vsyncpa [#allocation4], 1 }

</bundles_post_ra>
